<compile_context>
chip_gen: v7x
topology: tpu7x:2x2x1
jax: 0.10.0
libtpu: 0.0.40
codegen_flags: <defaults>
</compile_context>

<pallas_src>
import functools

import jax
import jax.numpy as jnp
from jax.experimental import pallas as pl
from jax.experimental.pallas import tpu as pltpu

SMOOTH = 1e-5
EPS = 1e-8
WEIGHT_CE = 1.0
WEIGHT_DICE = 1.0

# Tile-sizing budget counts double-buffered inputs + f32 accumulators.  Paired with
# an explicit scoped-VMEM limit below, these values are safe on v5e/v6e/v7x.
_TILE_BUDGET_BYTES = 20 * 1024 * 1024
_VMEM_LIMIT_BYTES = 28 * 1024 * 1024
_MAX_TILE_N = 32768   # compile-time sanity cap; per-step overhead already <<1% here


def _dice_ce_kernel(logits_ref, labels_ref, tp_ref, den_ref, ce_ref,
                    tp_acc, den_acc, ce_acc, *, num_classes, hw, tile_n):
    i = pl.program_id(1)
    ni = pl.num_programs(1)

    @pl.when(i == 0)
    def _():
        tp_acc[...] = jnp.zeros_like(tp_acc)
        den_acc[...] = jnp.zeros_like(den_acc)
        ce_acc[...] = jnp.zeros_like(ce_acc)

    def accumulate(masked):
        x = logits_ref[...].astype(jnp.float32)              # (C, TN)
        lab = labels_ref[...].astype(jnp.int32)               # (1, TN)
        if masked:
            col = jax.lax.broadcasted_iota(jnp.int32, (1, tile_n), 1) + i * tile_n
            valid = col < hw                                   # (1, TN)
            # out-of-range label -> onehot is naturally zero on padded columns
            lab = jnp.where(valid, lab, num_classes)

        # softmax / log-softmax over the class axis (within-vreg sublane reduce).
        m = jnp.max(x, axis=0, keepdims=True)                  # (1, TN)
        e = jnp.exp(x - m)                                     # (C, TN)  (EUP)
        s = jnp.sum(e, axis=0, keepdims=True)                  # (1, TN)
        p = e * pl.reciprocal(s, approx=False)                 # softmax probabilities
        cls = jax.lax.broadcasted_iota(jnp.int32, (num_classes, tile_n), 0)
        onehot = (cls == lab).astype(jnp.float32)              # (C, TN)
        if masked:
            p = jnp.where(valid, p, 0.0)                       # kill padded-column garbage

        # Lane-wide, VPU-only accumulation (no cross-lane reduce in the hot loop):
        #   tp  = sum(p * onehot)                 per class
        #   den = 2tp + fp + fn = sum(p) + count  per class  (single merged accumulator)
        tp_acc[...] += p * onehot
        den_acc[...] += p + onehot

        # cross entropy per column: logsumexp - logit[true class]
        lse = m + jnp.log(s)
        x_true = jnp.sum(x * onehot, axis=0, keepdims=True)
        ce = lse - x_true
        if masked:
            ce = jnp.where(valid, ce, 0.0)
        ce_acc[...] += ce

    if hw % tile_n == 0:
        accumulate(masked=False)            # hot path: no masking at all
    else:
        @pl.when(i < ni - 1)
        def _():
            accumulate(masked=False)

        @pl.when(i == ni - 1)
        def _():
            accumulate(masked=True)

    @pl.when(i == ni - 1)
    def _():
        # Single cross-lane reduction per batch; per-batch partial sums go to HBM,
        # the O(B*C) dice/CE combine happens in plain JAX in the wrapper.
        tp_ref[...] = jnp.sum(tp_acc[...], axis=1, keepdims=True)    # (C, 1)
        den_ref[...] = jnp.sum(den_acc[...], axis=1, keepdims=True)  # (C, 1)
        ce_ref[...] = jnp.sum(ce_acc[...], axis=1, keepdims=True)    # (1, 1)


def _pick_tile_n(num_classes, hw, logits_itemsize, label_itemsize,
                 budget_bytes=_TILE_BUDGET_BYTES):
    """Largest pixel tile whose VMEM footprint fits the budget.

    Counts 2x double-buffered input blocks (logits + labels) plus the three f32
    accumulators with their real sublane padding (C rounded up to a multiple of 8).
    """
    c_pad = ((num_classes + 7) // 8) * 8
    per_col = (2 * (num_classes * logits_itemsize + label_itemsize)   # inputs, 2-buffered
               + (2 * c_pad + 8) * 4)                                 # tp/den + ce accumulators
    cap = (budget_bytes // per_col) // 128 * 128
    cap = max(128, min(cap, _MAX_TILE_N))
    if hw <= cap:
        return hw   # single unmasked step; block dim == full array dim is always legal
    # Prefer an evenly-dividing tile (no masking anywhere) if it costs at most ~2x
    # the grid steps; otherwise accept one masked ragged last tile.
    d = cap
    while d >= max(128, cap // 2):
        if hw % d == 0:
            return d
        d -= 128
    return cap


def dice_cross_entropy_loss(net_output, target, *, tile_n=None):
    """net_output: (B, C, H, W) float logits; target: (B, 1, H, W) integer labels."""
    B, C, H, W = net_output.shape
    HW = H * W

    if net_output.dtype not in (jnp.float32, jnp.bfloat16):
        net_output = net_output.astype(jnp.float32)

    # Free layout change (contiguous reshape): NCHW -> (B, C, H*W). No HBM transpose.
    logits = net_output.reshape(B, C, HW)
    # Keep labels in their native integer dtype (no extra HBM cast pass); kernel
    # casts to int32 in-register.
    if jnp.issubdtype(target.dtype, jnp.integer):
        labels = target.reshape(B, 1, HW)
    else:
        labels = target.astype(jnp.int32).reshape(B, 1, HW)

    if tile_n is None:
        tile_n = _pick_tile_n(C, HW, jnp.dtype(logits.dtype).itemsize,
                              jnp.dtype(labels.dtype).itemsize)

    grid = (B, pl.cdiv(HW, tile_n))
    kernel = functools.partial(_dice_ce_kernel, num_classes=C, hw=HW, tile_n=tile_n)

    tp_part, den_part, ce_part = pl.pallas_call(
        kernel,
        out_shape=(
            jax.ShapeDtypeStruct((B, C, 1), jnp.float32),   # sum(p*onehot) per (b, class)
            jax.ShapeDtypeStruct((B, C, 1), jnp.float32),   # sum(p) + count per (b, class)
            jax.ShapeDtypeStruct((B, 1, 1), jnp.float32),   # CE sum per batch
        ),
        grid_spec=pltpu.PrefetchScalarGridSpec(
            num_scalar_prefetch=0,
            grid=grid,
            in_specs=[
                pl.BlockSpec((None, C, tile_n), lambda b, i: (b, 0, i)),
                pl.BlockSpec((None, 1, tile_n), lambda b, i: (b, 0, i)),
            ],
            out_specs=[
                pl.BlockSpec((None, C, 1), lambda b, i: (b, 0, 0)),
                pl.BlockSpec((None, C, 1), lambda b, i: (b, 0, 0)),
                pl.BlockSpec((None, 1, 1), lambda b, i: (b, 0, 0)),
            ],
            scratch_shapes=[
                pltpu.VMEM((C, tile_n), jnp.float32),   # tp accumulator
                pltpu.VMEM((C, tile_n), jnp.float32),   # denominator accumulator
                pltpu.VMEM((1, tile_n), jnp.float32),   # CE accumulator
            ],
        ),
        compiler_params=pltpu.CompilerParams(
            dimension_semantics=("parallel", "arbitrary"),
            vmem_limit_bytes=_VMEM_LIMIT_BYTES),
    )(logits, labels)

    # Tiny O(B*C) combine of the per-batch partial sums.
    tp = jnp.sum(tp_part[:, :, 0], axis=0)        # (C,)
    den = jnp.sum(den_part[:, :, 0], axis=0)      # (C,)  == 2*tp + fp + fn
    dc = (2.0 * tp + SMOOTH) / (den + SMOOTH + EPS)
    dice_loss = 1.0 - jnp.mean(dc[1:])            # do_bg=False: drop background class
    ce_loss = jnp.sum(ce_part) / float(B * HW)
    return WEIGHT_CE * ce_loss + WEIGHT_DICE * dice_loss


def _reference_loss(net_output, target):
    """Pure-JAX reference matching the PyTorch module semantics."""
    B, C, H, W = net_output.shape
    x = jax.nn.softmax(net_output.astype(jnp.float32), axis=1)
    onehot = jax.nn.one_hot(target[:, 0], C, axis=1, dtype=jnp.float32)  # (B,C,H,W)
    tp = jnp.sum(x * onehot, axis=(0, 2, 3))
    fp = jnp.sum(x * (1.0 - onehot), axis=(0, 2, 3))
    fn = jnp.sum((1.0 - x) * onehot, axis=(0, 2, 3))
    dc = (2.0 * tp + SMOOTH) / (2.0 * tp + fp + fn + SMOOTH + EPS)
    dice_loss = 1.0 - jnp.mean(dc[1:])
    logp = jax.nn.log_softmax(net_output.astype(jnp.float32), axis=1)
    ce = -jnp.mean(jnp.take_along_axis(logp, target.astype(jnp.int32), axis=1))
    return WEIGHT_CE * ce + WEIGHT_DICE * dice_loss


if __name__ == "__main__":
    key = jax.random.PRNGKey(0)
    k1, k2 = jax.random.split(key)
    B, C, H, W = 2, 4, 16, 16
    net_output = jax.random.normal(k1, (B, C, H, W), dtype=jnp.float32)
    target = jax.random.randint(k2, (B, 1, H, W), 0, C, dtype=jnp.int32)

    loss = dice_cross_entropy_loss(net_output, target)
    loss = jax.block_until_ready(loss)

    ref = _reference_loss(net_output, target)
    assert jnp.allclose(loss, ref, rtol=1e-5, atol=1e-5), (loss, ref)
    print("KERNEL_OK")
</pallas_src>

<mosaic_0001>
module attributes {stable_mosaic.version = 11 : i64} {
  func.func @_dice_ce_kernel(%arg0: i32, %arg1: i32, %arg2: memref<1x4x256xf32, #tpu.memory_space<vmem>>, %arg3: memref<1x1x256xi32, #tpu.memory_space<vmem>>, %arg4: memref<1x4x1xf32, #tpu.memory_space<vmem>>, %arg5: memref<1x4x1xf32, #tpu.memory_space<vmem>>, %arg6: memref<1x1x1xf32, #tpu.memory_space<vmem>>, %arg7: memref<4x256xf32, #tpu.memory_space<vmem>>, %arg8: memref<4x256xf32, #tpu.memory_space<vmem>>, %arg9: memref<1x256xf32, #tpu.memory_space<vmem>>) attributes {dimension_semantics = [#tpu.dimension_semantics<parallel>, #tpu.dimension_semantics<arbitrary>], iteration_bounds = array<i64: 2, 1>, scalar_prefetch = 0 : i64, scratch_operands = 3 : i64, tpu.core_type = #tpu.core_type<tc>, window_params = [{transform_indices = @transform_0, window_bounds = array<i64: 1, 4, 256>}, {transform_indices = @transform_1, window_bounds = array<i64: 1, 1, 256>}, {transform_indices = @transform_2, window_bounds = array<i64: 1, 4, 1>}, {transform_indices = @transform_3, window_bounds = array<i64: 1, 4, 1>}, {transform_indices = @transform_4, window_bounds = array<i64: 1, 1, 1>}]} {
    %c0_i32 = arith.constant 0 : i32
    %0 = arith.cmpi eq, %arg1, %c0_i32 : i32
    %1 = arith.extui %0 : i1 to i32
    %c0_i32_0 = arith.constant 0 : i32
    %2 = arith.cmpi ne, %1, %c0_i32_0 : i32
    scf.if %2 {
      %cst_22 = arith.constant 0.000000e+00 : f32
      %42 = vector.broadcast %cst_22 : f32 to vector<4x256xf32>
      %c0_23 = arith.constant 0 : index
      %c0_24 = arith.constant 0 : index
      %43 = vector.load %arg7[%c0_23, %c0_24] : memref<4x256xf32, #tpu.memory_space<vmem>>, vector<4x256xf32>
      tpu.vector_store %arg7[%c0_23, %c0_24], %42 {strides = array<i32>} : memref<4x256xf32, #tpu.memory_space<vmem>>, vector<4x256xf32>,
      %cst_25 = arith.constant 0.000000e+00 : f32
      %44 = vector.broadcast %cst_25 : f32 to vector<4x256xf32>
      %c0_26 = arith.constant 0 : index
      %c0_27 = arith.constant 0 : index
      %45 = vector.load %arg8[%c0_26, %c0_27] : memref<4x256xf32, #tpu.memory_space<vmem>>, vector<4x256xf32>
      tpu.vector_store %arg8[%c0_26, %c0_27], %44 {strides = array<i32>} : memref<4x256xf32, #tpu.memory_space<vmem>>, vector<4x256xf32>,
      %cst_28 = arith.constant 0.000000e+00 : f32
      %46 = vector.broadcast %cst_28 : f32 to vector<1x256xf32>
      %c0_29 = arith.constant 0 : index
      %c0_30 = arith.constant 0 : index
      %47 = vector.load %arg9[%c0_29, %c0_30] : memref<1x256xf32, #tpu.memory_space<vmem>>, vector<1x256xf32>
      tpu.vector_store %arg9[%c0_29, %c0_30], %46 {strides = array<i32>} : memref<1x256xf32, #tpu.memory_space<vmem>>, vector<1x256xf32>,
    } else {
    }
    %c0 = arith.constant 0 : index
    %c0_1 = arith.constant 0 : index
    %c0_2 = arith.constant 0 : index
    %3 = vector.load %arg2[%c0, %c0_1, %c0_2] : memref<1x4x256xf32, #tpu.memory_space<vmem>>, vector<1x4x256xf32>
    %4 = vector.shape_cast %3 : vector<1x4x256xf32> to vector<4x256xf32>
    %c0_3 = arith.constant 0 : index
    %c0_4 = arith.constant 0 : index
    %c0_5 = arith.constant 0 : index
    %5 = vector.load %arg3[%c0_3, %c0_4, %c0_5] : memref<1x1x256xi32, #tpu.memory_space<vmem>>, vector<1x1x256xi32>
    %6 = vector.shape_cast %5 : vector<1x1x256xi32> to vector<1x256xi32>
    %cst = arith.constant dense<0xFF800000> : vector<256xf32>
    %7 = vector.multi_reduction <maximumf>, %4, %cst [0] : vector<4x256xf32> to vector<256xf32>
    %8 = vector.shape_cast %7 : vector<256xf32> to vector<1x256xf32>
    %9 = vector.broadcast %8 : vector<1x256xf32> to vector<4x256xf32>
    %10 = arith.subf %4, %9 : vector<4x256xf32>
    %11 = math.exp %10 : vector<4x256xf32>
    %cst_6 = arith.constant dense<0.000000e+00> : vector<256xf32>
    %12 = vector.multi_reduction <add>, %11, %cst_6 [0] : vector<4x256xf32> to vector<256xf32>
    %13 = vector.shape_cast %12 : vector<256xf32> to vector<1x256xf32>
    %14 = tpu.reciprocal %13 : vector<1x256xf32> -> vector<1x256xf32>
    %15 = vector.broadcast %14 : vector<1x256xf32> to vector<4x256xf32>
    %16 = arith.mulf %11, %15 : vector<4x256xf32>
    %17 = tpu.iota {dimensions = array<i32: 0>} : vector<4x256xi32>
    %18 = vector.broadcast %6 : vector<1x256xi32> to vector<4x256xi32>
    %19 = arith.cmpi eq, %17, %18 : vector<4x256xi32>
    %20 = arith.extui %19 : vector<4x256xi1> to vector<4x256xi32>
    %21 = arith.sitofp %20 : vector<4x256xi32> to vector<4x256xf32>
    %c0_7 = arith.constant 0 : index
    %c0_8 = arith.constant 0 : index
    %22 = vector.load %arg7[%c0_7, %c0_8] : memref<4x256xf32, #tpu.memory_space<vmem>>, vector<4x256xf32>
    %23 = arith.mulf %16, %21 : vector<4x256xf32>
    %24 = arith.addf %22, %23 : vector<4x256xf32>
    %c0_9 = arith.constant 0 : index
    %c0_10 = arith.constant 0 : index
    %25 = vector.load %arg7[%c0_9, %c0_10] : memref<4x256xf32, #tpu.memory_space<vmem>>, vector<4x256xf32>
    tpu.vector_store %arg7[%c0_9, %c0_10], %24 {strides = array<i32>} : memref<4x256xf32, #tpu.memory_space<vmem>>, vector<4x256xf32>,
    %c0_11 = arith.constant 0 : index
    %c0_12 = arith.constant 0 : index
    %26 = vector.load %arg8[%c0_11, %c0_12] : memref<4x256xf32, #tpu.memory_space<vmem>>, vector<4x256xf32>
    %27 = arith.addf %16, %21 : vector<4x256xf32>
    %28 = arith.addf %26, %27 : vector<4x256xf32>
    %c0_13 = arith.constant 0 : index
    %c0_14 = arith.constant 0 : index
    %29 = vector.load %arg8[%c0_13, %c0_14] : memref<4x256xf32, #tpu.memory_space<vmem>>, vector<4x256xf32>
    tpu.vector_store %arg8[%c0_13, %c0_14], %28 {strides = array<i32>} : memref<4x256xf32, #tpu.memory_space<vmem>>, vector<4x256xf32>,
    %30 = math.log %13 : vector<1x256xf32>
    %31 = arith.addf %8, %30 : vector<1x256xf32>
    %32 = arith.mulf %4, %21 : vector<4x256xf32>
    %cst_15 = arith.constant dense<0.000000e+00> : vector<256xf32>
    %33 = vector.multi_reduction <add>, %32, %cst_15 [0] : vector<4x256xf32> to vector<256xf32>
    %34 = vector.shape_cast %33 : vector<256xf32> to vector<1x256xf32>
    %35 = arith.subf %31, %34 : vector<1x256xf32>
    %c0_16 = arith.constant 0 : index
    %c0_17 = arith.constant 0 : index
    %36 = vector.load %arg9[%c0_16, %c0_17] : memref<1x256xf32, #tpu.memory_space<vmem>>, vector<1x256xf32>
    %37 = arith.addf %36, %35 : vector<1x256xf32>
    %c0_18 = arith.constant 0 : index
    %c0_19 = arith.constant 0 : index
    %38 = vector.load %arg9[%c0_18, %c0_19] : memref<1x256xf32, #tpu.memory_space<vmem>>, vector<1x256xf32>
    tpu.vector_store %arg9[%c0_18, %c0_19], %37 {strides = array<i32>} : memref<1x256xf32, #tpu.memory_space<vmem>>, vector<1x256xf32>,
    %c0_i32_20 = arith.constant 0 : i32
    %39 = arith.cmpi eq, %arg1, %c0_i32_20 : i32
    %40 = arith.extui %39 : i1 to i32
    %c0_i32_21 = arith.constant 0 : i32
    %41 = arith.cmpi ne, %40, %c0_i32_21 : i32
    scf.if %41 {
      %c0_22 = arith.constant 0 : index
      %c0_23 = arith.constant 0 : index
      %42 = vector.load %arg7[%c0_22, %c0_23] : memref<4x256xf32, #tpu.memory_space<vmem>>, vector<4x256xf32>
      %cst_24 = arith.constant dense<0.000000e+00> : vector<4xf32>
      %43 = vector.multi_reduction <add>, %42, %cst_24 [1] : vector<4x256xf32> to vector<4xf32>
      %44 = vector.shape_cast %43 : vector<4xf32> to vector<4x1xf32>
      %c0_25 = arith.constant 0 : index
      %c0_26 = arith.constant 0 : index
      %c0_27 = arith.constant 0 : index
      %45 = vector.load %arg4[%c0_25, %c0_26, %c0_27] : memref<1x4x1xf32, #tpu.memory_space<vmem>>, vector<1x4x1xf32>
      %46 = vector.shape_cast %45 : vector<1x4x1xf32> to vector<4x1xf32>
      %47 = vector.shape_cast %44 : vector<4x1xf32> to vector<1x4x1xf32>
      tpu.vector_store %arg4[%c0_25, %c0_26, %c0_27], %47 {strides = array<i32>} : memref<1x4x1xf32, #tpu.memory_space<vmem>>, vector<1x4x1xf32>,
      %c0_28 = arith.constant 0 : index
      %c0_29 = arith.constant 0 : index
      %48 = vector.load %arg8[%c0_28, %c0_29] : memref<4x256xf32, #tpu.memory_space<vmem>>, vector<4x256xf32>
      %cst_30 = arith.constant dense<0.000000e+00> : vector<4xf32>
      %49 = vector.multi_reduction <add>, %48, %cst_30 [1] : vector<4x256xf32> to vector<4xf32>
      %50 = vector.shape_cast %49 : vector<4xf32> to vector<4x1xf32>
      %c0_31 = arith.constant 0 : index
      %c0_32 = arith.constant 0 : index
      %c0_33 = arith.constant 0 : index
      %51 = vector.load %arg5[%c0_31, %c0_32, %c0_33] : memref<1x4x1xf32, #tpu.memory_space<vmem>>, vector<1x4x1xf32>
      %52 = vector.shape_cast %51 : vector<1x4x1xf32> to vector<4x1xf32>
      %53 = vector.shape_cast %50 : vector<4x1xf32> to vector<1x4x1xf32>
      tpu.vector_store %arg5[%c0_31, %c0_32, %c0_33], %53 {strides = array<i32>} : memref<1x4x1xf32, #tpu.memory_space<vmem>>, vector<1x4x1xf32>,
      %c0_34 = arith.constant 0 : index
      %c0_35 = arith.constant 0 : index
      %54 = vector.load %arg9[%c0_34, %c0_35] : memref<1x256xf32, #tpu.memory_space<vmem>>, vector<1x256xf32>
      %cst_36 = arith.constant dense<0.000000e+00> : vector<1xf32>
      %55 = vector.multi_reduction <add>, %54, %cst_36 [1] : vector<1x256xf32> to vector<1xf32>
      %56 = vector.shape_cast %55 : vector<1xf32> to vector<1x1xf32>
      %c0_37 = arith.constant 0 : index
      %c0_38 = arith.constant 0 : index
      %c0_39 = arith.constant 0 : index
      %57 = vector.load %arg6[%c0_37, %c0_38, %c0_39] : memref<1x1x1xf32, #tpu.memory_space<vmem>>, vector<1x1x1xf32>
      %58 = vector.shape_cast %57 : vector<1x1x1xf32> to vector<1x1xf32>
      %59 = vector.shape_cast %56 : vector<1x1xf32> to vector<1x1x1xf32>
      tpu.vector_store %arg6[%c0_37, %c0_38, %c0_39], %59 {strides = array<i32>} : memref<1x1x1xf32, #tpu.memory_space<vmem>>, vector<1x1x1xf32>,
    } else {
    }
    return
  }
  func.func @transform_0(%arg0: i32, %arg1: i32) -> (i32, i32, i32) {
    %c0_i32 = arith.constant 0 : i32
    %c0_i32_0 = arith.constant 0 : i32
    return %arg0, %c0_i32, %arg1 : i32, i32, i32
  }
  func.func @transform_1(%arg0: i32, %arg1: i32) -> (i32, i32, i32) {
    %c0_i32 = arith.constant 0 : i32
    %c0_i32_0 = arith.constant 0 : i32
    return %arg0, %c0_i32, %arg1 : i32, i32, i32
  }
  func.func @transform_2(%arg0: i32, %arg1: i32) -> (i32, i32, i32) {
    %c0_i32 = arith.constant 0 : i32
    %c0_i32_0 = arith.constant 0 : i32
    %c0_i32_1 = arith.constant 0 : i32
    return %arg0, %c0_i32, %c0_i32_0 : i32, i32, i32
  }
  func.func @transform_3(%arg0: i32, %arg1: i32) -> (i32, i32, i32) {
    %c0_i32 = arith.constant 0 : i32
    %c0_i32_0 = arith.constant 0 : i32
    %c0_i32_1 = arith.constant 0 : i32
    return %arg0, %c0_i32, %c0_i32_0 : i32, i32, i32
  }
  func.func @transform_4(%arg0: i32, %arg1: i32) -> (i32, i32, i32) {
    %c0_i32 = arith.constant 0 : i32
    %c0_i32_0 = arith.constant 0 : i32
    %c0_i32_1 = arith.constant 0 : i32
    return %arg0, %c0_i32, %c0_i32_0 : i32, i32, i32
  }
}

</mosaic_0001>

<bundles_post_ra>
// kernel: tpu_custom_call.1
= control target key start
LH: loop header
LB: loop body
LE: loop exit
PB: predicated region body
PF: predicated region fallthrough
CT: control target
= control target key end

     0   :  { %10 = vsyncpa [#allocation6], 0  ;;  %s1080_s0 = inlined_call_operand.hbm [shape: f32[2,4,256], index: 0, kind: input, shape index: {}]   ;;  %s1081_s1 = inlined_call_operand.hbm [shape: s32[2,1,256], index: 1, kind: input, shape index: {}]   ;;  %s1082_s2 = inlined_call_operand.vmem [shape: f32[2,4,1], index: 2, kind: output, shape index: {0}]   ;;  %s1083_s3 = inlined_call_operand.vmem [shape: f32[2,4,1], index: 3, kind: output, shape index: {1}]   ;;  %s1084_s4 = inlined_call_operand.vmem [shape: f32[2,1,1], index: 4, kind: output, shape index: {2}]  }
   0x1   :  { %12 = vsyncpa [#allocation6 + $0x1], 0 }
   0x2   :  { %13 = vsyncpa [#allocation8], 0 }
   0x3   :  { %15 = vsyncpa [#allocation8 + $0x1], 0  ;;  %s875_s15 = smov 0   ;;  %s877_s16 = smov 0  }
   0x4   :  { %s879_s17 = smov 0   ;;  %s881_s18 = smov 0  }
   0x5   :  { %s883_s19 = smov 0   ;;  %s885_s20 = smov 0  }
   0x6 LB: > { %s636_s21 = sadd.s32 4294967295, %s844_s20   ;;  %s33_s22 = sadd.s32 1, %s840_s19  ;;  %s844_s20 = sphi %s885_s20, %s21_s20   ;;  %s840_s19 = sphi %s883_s19, %s1100_s19   ;;  %s836_s18 = sphi %s881_s18, %s1099_s18   ;;  %s832_s17 = sphi %s879_s17, %s1098_s17   ;;  %s828_s16 = sphi %s877_s16, %s1097_s16   ;;  %s824_s15 = sphi %s875_s15, %s1096_s15  }
   0x7   : > { %p35_p0 = scmp.ge.s32.totalorder %s33_s22, 2  ;;  %s42_s23 = sadd.s32 1, %s832_s17 }
   0x8   : > { %p49_p1 = scmp.ne.s32.totalorder %s832_s17, %s828_s16  ;;  %p50_p2 = scmp.eq.s32.totalorder %s844_s20, 0 }
   0x9   : > { %s1102_s22 = smov (%p35_p0, %s33_s22), 0  ;;  %p55_p4 = scmp.ne.s32.totalorder %s828_s16, %s824_s15 }
   0xa   : > { %p911_p3 = por %p50_p2, %p49_p1  ;;  %s37_s25 = ssub.s32 %s840_s19, %s1102_s22 }
   0xb   : > { %p56_p5 = scmp.eq.s32.totalorder %s636_s21, 0  ;;  %p40_p6 = scmp.eq.s32.totalorder %s37_s25, 0 }
   0xc   : > { %p668_p8 = scmp.lt.s32.totalorder %s844_s20, 2  ;;  %s927_s28 = sand.u32 1, %s832_s17  }
   0xd   : > { %p918_p7 = por %p56_p5, %p55_p4  ;;  %s655_s29 = sshll.u32 %s840_s19, 7 }
   0xe   : > { %s924_s27 = scalar_select %p40_p6, %s832_s17, %s42_s23  }
   0xf   : > { %s1087_s26 = scalar_select %p918_p7, 1, 0 }
  0x10   : > { %s640_s30 = sshll.u32 %s927_s28, 3  ;;  %s934_s7 = scalar_lea.hbm %s1080_s0, %s655_s29 }
  0x11   : > { %s189_s8 = scalar_lea.vmem [#allocation5], %s640_s30  ;;  %p938_p9 = pnand %p668_p8, %p911_p3 }
  0x12   : > { %s199_s9 = sshll.u32 %s189_s8, 4  ;;  %s186_s11 = scalar_lea.sflag [#allocation6], %s927_s28  ;;  %s942_s9 = int_to_ptr.vmem [resolvable:$true] %s199_s9 }
  0x13   : > { %s730_s12 = scalar_lea.hbm %s934_s7, 128  ;;  %p732_p13 = pneg %p938_p9 }
  0x14   : > { %p731_p12 = scmp.ne.s32.totalorder %s934_s7, %s730_s12  ;;  %s735_s15 = scalar_lea.hbm %s1080_s0, 256 }
  0x15   : > { %p736_p2 = scmp.lt.u32.totalorder %s934_s7, %s1080_s0  ;;  %p737_p3 = scmp.lt.u32.totalorder %s735_s15, %s730_s12 }
  0x16   : > { %p733_p0 = pnand %p732_p13, %p731_p12  ;;  %p739_p5 = scmp.lt.u32.totalorder %s730_s12, %s934_s7 }
  0x17   : > { %p738_p4 = por %p737_p3, %p736_p2 }
  0x18   : > { %p734_p1 = pneg %p733_p0 }
  0x19   : > { %p740_p6 = por %p739_p5, %p738_p4 }
  0x1b   : > { %p741_p8 = pnand %p740_p6, %p734_p1 }
  0x1d   : > { %744 = shalt.err (!%p741_p8)
}
  0x1e   : > { %s745_s24 = scalar_lea.vmem %s942_s9, 128  ;;  %s846_s25 = smov [#allocation5]  }
  0x1f   : > { %p746_p12 = scmp.ne.s32.totalorder %s942_s9, %s745_s24  ;;  %s750_s29 = sshll.u32 %s846_s25, 4  ;;  %s751_s29 = int_to_ptr.vmem [resolvable:$false] %s750_s29 }
  0x20   : > { %s752_s30 = scalar_lea.vmem %s751_s29, 256  ;;  %p753_p11 = scmp.lt.s32.totalorder %s942_s9, %s751_s29 }
  0x21   : > { %p748_p0 = pnand %p746_p12, %p732_p13  ;;  %p754_p2 = scmp.lt.s32.totalorder %s752_s30, %s745_s24 }
  0x23   : > { %p749_p10 = pneg %p748_p0  ;;  %p755_p3 = por %p754_p2, %p753_p11 }
  0x25   : > { %p756_p4 = pnand %p755_p3, %p749_p10 }
  0x27   : > { %759 = shalt.err (!%p756_p4)
}
  0x28   : > { %664 = dma.hbm_to_vmem [thread:$0]  (!%p938_p9), %s934_s7, 128, %s942_s9, %s186_s11  }
  0x29   : > { %p1089_p1 = scmp.lt.s32.totalorder %s844_s20, 3  ;;  %p1090_p5 = scmp.ge.s32.totalorder %s844_s20, 1 }
  0x2a   : > { %s643_s6 = sshll.u32 %s927_s28, 1  ;;  %s656_s8 = sshll.u32 %s840_s19, 5 }
  0x2b   : > { %p976_p6 = pnand %p1090_p5, %p1089_p1  ;;  %s985_s14 = scalar_lea.hbm %s1081_s1, %s656_s8 }
  0x2c   : > { %s210_s15 = scalar_lea.vmem [#allocation7], %s643_s6  ;;  %s207_s7 = scalar_lea.sflag [#allocation8], %s927_s28 }
  0x2d   : > { %s1091_s5 = scalar_select %p976_p6, 1, 0 }
  0x2e   : > { %s220_s21 = sshll.u32 %s210_s15, 4  ;;  %s760_s9 = scalar_lea.hbm %s985_s14, 32  ;;  %s221_s21 = int_to_ptr.vmem [resolvable:$true] %s220_s21 }
  0x2f   : > { %p761_p10 = scmp.ne.s32.totalorder %s985_s14, %s760_s9  ;;  %s765_s24 = scalar_lea.hbm %s1081_s1, 64 }
  0x30   : > { %p766_p12 = scmp.lt.u32.totalorder %s985_s14, %s1081_s1  ;;  %p767_p0 = scmp.lt.u32.totalorder %s765_s24, %s760_s9 }
  0x31   : > { %p763_p11 = pnand %p761_p10, %p732_p13  ;;  %p769_p3 = scmp.lt.u32.totalorder %s760_s9, %s985_s14 }
  0x32   : > { %p768_p2 = por %p767_p0, %p766_p12 }
  0x33   : > { %p764_p8 = pneg %p763_p11 }
  0x34   : > { %p770_p4 = por %p769_p3, %p768_p2 }
  0x36   : > { %p771_p1 = pnand %p770_p4, %p764_p8 }
  0x38   : > { %774 = shalt.err (!%p771_p1)
}
  0x39   : > { %s775_s28 = scalar_lea.vmem %s221_s21, 32  ;;  %s847_s30 = smov [#allocation7]  }
  0x3a   : > { %p776_p5 = scmp.ne.s32.totalorder %s221_s21, %s775_s28  ;;  %s780_s6 = sshll.u32 %s847_s30, 4  ;;  %s781_s6 = int_to_ptr.vmem [resolvable:$false] %s780_s6 }
  0x3b   : > { %s782_s8 = scalar_lea.vmem %s781_s6, 64  ;;  %p783_p7 = scmp.lt.s32.totalorder %s221_s21, %s781_s6 }
  0x3c   : > { %p778_p10 = pnand %p776_p5, %p732_p13  ;;  %p784_p6 = scmp.lt.s32.totalorder %s782_s8, %s775_s28 }
  0x3e   : > { %p779_p11 = pneg %p778_p10  ;;  %p785_p0 = por %p784_p6, %p783_p7 }
  0x40   : > { %p786_p12 = pnand %p785_p0, %p779_p11 }
  0x42   : > { %789 = shalt.err (!%p786_p12)
}
  0x43   : > { %667 = dma.hbm_to_vmem [thread:$0]  (!%p938_p9), %s985_s14, 32, %s221_s21, %s207_s7  }
  0x44   : > { %p1092_p8 = scmp.ne.s32.totalorder %s1091_s5, 0 }
  0x45   : > { %s231_s12 = sand.u32 (!%p1092_p8), 1, %s828_s16   ;;  %p1093_p13 = scmp.ne.s32.totalorder (!%p1092_p8), %s1087_s26, 0 }
  0x46   : > { %229 = sbr.rel (%p1092_p8) target bundleno = 311 (0x137), region = 28  ;;  %s647_s13 = sshll.u32 (!%p1092_p8), %s231_s12, 3 }
  0x47   : > { %s232_s15 = scalar_lea.sflag (!%p1092_p8), [#allocation6], %s231_s12  ;;  %s235_s9 = scalar_lea.vmem (!%p1092_p8), [#allocation5], %s647_s13 }
  0x4d   : > { %815 = dma.done.wait (%p1093_p13), %s232_s15, 128  }
  0x4e   : > { %817 = vsyncadd (%p1093_p13), %s232_s15, 4294967168  ;;  %s648_s11 = sshll.u32 %s231_s12, 1  ;;  %s241_s23 = scalar_lea.sflag [#allocation8], %s231_s12 }
  0x4f   : > { %s244_s10 = scalar_lea.vmem [#allocation7], %s648_s11 }
  0x50   : > { %819 = dma.done.wait (%p1093_p13), %s241_s23, 32  }
  0x51   : > { %821 = vsyncadd (%p1093_p13), %s241_s23, 4294967264  ;;  %v299_v0 = vlaneseq  ;;  %v848_v2 = vmov 0.0   ;;  %vm309_vm1 = vcmask 1043456   ;;  %v304_v3 = vld [vmem:[%s235_s9] sm:$0xff]  ;;  %v305_v19 = vld [vmem:[%s244_s10] sm:$0x3] }
  0x52   : > { %v307_v4 = vcombine.high %v304_v3, %v304_v3  ;;  %v310_v5 = vsel %vm309_vm1, %v304_v3, -inf  ;;  %v849_v62 = vmov 1966171168   ;;  %vm470_vm4 = vcmask 1040384   ;;  %p282_p7 = scmp.lt.s32.totalorder %s836_s18, 1 }
  0x53   : > { %vm1018_vm0 = vcmp.lt.s32.totalorder %v299_v0, 256  ;;  %v311_v6 = vrot.slane %v310_v5, 4  ;;  %v1026_v12 = vshrl.u32 %v299_v0, 7  ;;  %v414_v63 = vunpack.c.l.s4 %v849_v62 }
  0x54   : > { %303 = vst.msk [vmem:[#allocation4] sm:$0x3] %vm1018_vm0, %v848_v2  ;;  %v317_v7 = vsel %vm309_vm1, %v307_v4, -inf  ;;  %s1104_s18 = smov (!%p282_p7, %s836_s18), 1  ;;  %vm446_vm5 = vcmask 3072   ;;  %vm476_vm6 = vcmask 0  }
  0x55   : > { %v312_v8 = vmax.f32 %v310_v5, %v311_v6  ;;  %v318_v9 = vrot.slane %v317_v7, 4  ;;  %v359_v17 = vsub.s32 0, %v1026_v12  ;;  %v363_v18 = vsub.s32 1, %v1026_v12  ;;  %s649_s26 = sshll.u32 %s1104_s18, 2  ;;  %s292_s30 = scalar_lea.vmem %s1084_s4, %s1104_s18 }
  0x56   : > { %s285_s21 = scalar_lea.vmem %s1082_s2, %s649_s26  ;;  %s289_s25 = scalar_lea.vmem %s1083_s3, %s649_s26 }
  0x57   : > { %v313_v10 = vrot.slane %v312_v8, 2  ;;  %v319_v11 = vmax.f32 %v317_v7, %v318_v9  ;;  %v360_v23 = vrot.slane %v305_v19, %v359_v17  ;;  %v364_v24 = vrot.slane %v305_v19, %v363_v18 }
  0x59   : > { %v314_v13 = vmax.f32 %v312_v8, %v313_v10  ;;  %v320_v14 = vrot.slane %v319_v11, 2  ;;  %vm365_vm2 = vcmp.eq.s32.totalorder %v1026_v12, %v360_v23  ;;  %vm366_vm3 = vcmp.eq.s32.totalorder %v1026_v12, %v364_v24 }
  0x5a   : > { %v651_v28 = vsel %vm365_vm2, 1.0, %v848_v2  ;;  %v652_v29 = vsel %vm366_vm3, 1.0, %v848_v2  ;;  %v415_v10 = vunpack.c.0.s8 %v414_v63 }
  0x5b   : > { %v315_v15 = vrot.slane %v314_v13, 1  ;;  %v321_v16 = vmax.f32 %v319_v11, %v320_v14  ;;  %v374_v30 = vcombine.low %v651_v28, %v652_v29 }
  0x5d   : > { %v316_v20 = vmax.f32 %v314_v13, %v315_v15  ;;  %v322_v21 = vrot.slane %v321_v16, 1  ;;  %v389_v31 = vmul.f32 %v374_v30, %v304_v3 }
  0x5f   : > { %v323_v22 = vmax.f32 %v321_v16, %v322_v21  ;;  %v391_v35 = vcombine.high %v389_v31, %v389_v31  ;;  %v393_v38 = vsel %vm309_vm1, %v389_v31, 0.0  ;;  %v418_v21 = vsub.s32 %v415_v10, %v1026_v12 }
  0x60   : > { %v394_v44 = vrot.slane %v393_v38, 4 }
  0x61   : > { %v326_v25 = vcombine.low %v316_v20, %v323_v22  ;;  %v400_v41 = vsel %vm309_vm1, %v391_v35, 0.0 }
  0x62   : > { %v401_v47 = vrot.slane %v400_v41, 4  ;;  %v395_v50 = vadd.f32 %v394_v44, %v393_v38 }
  0x63   : > { %v328_v26 = vsub.f32 %v304_v3, %v326_v25 }
  0x64   : > { %v402_v53 = vadd.f32 %v401_v47, %v400_v41  ;;  %v396_v55 = vrot.slane %v395_v50, 2 }
  0x65   : > { %v329_v27 = vmul.f32 1.442695, %v328_v26 }
  0x66   : > { %v403_v56 = vrot.slane %v402_v53, 2  ;;  %v397_v57 = vadd.f32 %v396_v55, %v395_v50 }
  0x67   : > { %720 = vpow2.f32 %v329_v27 }
  0x68   : > { %v404_v58 = vadd.f32 %v403_v56, %v402_v53  ;;  %v398_v59 = vrot.slane %v397_v57, 1 }
  0x6a   : > { %v405_v61 = vrot.slane %v404_v58, 1  ;;  %v399_v4 = vadd.f32 %v398_v59, %v397_v57 }
  0x6c   : > { %v406_v9 = vadd.f32 %v405_v61, %v404_v58 }
  0x71   : > { %v721_v32 = vpop.eup %720 }
  0x72   : > { %v332_v33 = vcombine.high %v721_v32, %v721_v32  ;;  %v334_v34 = vsel %vm309_vm1, %v721_v32, 0.0 }
  0x73   : > { %v335_v36 = vrot.slane %v334_v34, 4 }
  0x74   : > { %v341_v37 = vsel %vm309_vm1, %v332_v33, 0.0 }
  0x75   : > { %v336_v39 = vadd.f32 %v335_v36, %v334_v34  ;;  %v342_v40 = vrot.slane %v341_v37, 4 }
  0x77   : > { %v337_v42 = vrot.slane %v336_v39, 2  ;;  %v343_v43 = vadd.f32 %v342_v40, %v341_v37 }
  0x79   : > { %v338_v45 = vadd.f32 %v337_v42, %v336_v39  ;;  %v344_v46 = vrot.slane %v343_v43, 2 }
  0x7b   : > { %v339_v48 = vrot.slane %v338_v45, 1  ;;  %v345_v49 = vadd.f32 %v344_v46, %v343_v43 }
  0x7d   : > { %v340_v51 = vadd.f32 %v339_v48, %v338_v45  ;;  %v346_v52 = vrot.slane %v345_v49, 1 }
  0x7f   : > { %v347_v54 = vadd.f32 %v346_v52, %v345_v49  ;;  %722 = vrcp.f32 %v340_v51 }
  0x80   : > { %724 = vlog2.f32 %v340_v51 }
  0x81   : > { %726 = vrcp.f32 %v347_v54 }
  0x82   : > { %728 = vlog2.f32 %v347_v54 }
  0x89   : > { %v723_v60 = vpop.eup %722 }
  0x8a   : > { %v725_v0 = vpop.eup %724 }
  0x8b   : > { %v727_v2 = vpop.eup %726  ;;  %v384_v3 = vmul.f32 0.6931472, %v725_v0 }
  0x8c   : > { %v729_v5 = vpop.eup %728  ;;  %v352_v6 = vcombine.low %v723_v60, %v727_v2 }
  0x8d   : > { %v386_v7 = vmul.f32 0.6931472, %v729_v5  ;;  %v387_v8 = vadd.f32 %v384_v3, %v316_v20 }
  0x8e   : > { %v354_v11 = vmul.f32 %v721_v32, %v352_v6 }
  0x8f   : > { %v388_v13 = vadd.f32 %v386_v7, %v323_v22  ;;  %v407_v14 = vsub.f32 %v387_v8, %v399_v4  ;;  %v409_v22 = vld [vmem:[#allocation4] sm:$0x3] }
  0x90   : > { %v376_v15 = vmul.f32 %v374_v30, %v354_v11  ;;  %v380_v16 = vadd.f32 %v374_v30, %v354_v11 }
  0x91   : > { %v408_v19 = vsub.f32 %v388_v13, %v406_v9 }
  0x92   : > { %v439_v23 = vcombine.high %v376_v15, %v376_v15  ;;  %v441_v24 = vsel %vm309_vm1, %v376_v15, 0.0  ;;  %v450_v25 = vcombine.high %v380_v16, %v380_v16  ;;  %v452_v28 = vsel %vm309_vm1, %v380_v16, 0.0 }
  0x93   : > { %v412_v26 = vcombine.low %v407_v14, %v408_v19 }
  0x94   : > { %v442_v27 = vsel %vm309_vm1, %v439_v23, 0.0  ;;  %v453_v20 = vsel %vm309_vm1, %v450_v25, 0.0 }
  0x95   : > { %v419_v29 = vrot.slane %v412_v26, %v418_v21  ;;  %v443_v31 = vadd.f32 %v442_v27, %v441_v24  ;;  %v454_v32 = vadd.f32 %v453_v20, %v452_v28 }
  0x97   : > { %v426_v30 = vrot.slane %v419_v29, %v418_v21  ;;  %444 = vadd.xlane.f32.xlu0 %v443_v31 }
  0x99   : > { %v428_v33 = vadd.f32 %v426_v30, %v409_v22 }
  0x9b   : > { %433 = vst.msk [vmem:[#allocation4] sm:$0x3] %vm1018_vm0, %v428_v33  ;;  %455 = vadd.xlane.f32.xlu0 %v454_v32 }
  0xa2   : > { %v458_v34 = vld [vmem:[#allocation4] sm:$0x3] }
  0xa3   : > { %v463_v35 = vrot.slane %v458_v34, %v359_v17  ;;  %v467_v36 = vrot.slane %v458_v34, %v363_v18 }
  0xa5   : > { %v471_v37 = vsel %vm470_vm4, %v463_v35, 0.0  ;;  %v472_v38 = vsel %vm470_vm4, %v467_v36, 0.0 }
  0xa6   : > { %v473_v39 = vadd.f32 %v472_v38, %v471_v37 }
  0xa8   : > { %474 = vadd.xlane.f32.xlu1 %v473_v39 }
 0x124   : > { %v445_v1 = vpop.xlane.xlu0 %444 }
 0x125   : > { %447 = vst.msk [vmem:[%s285_s21] sm:$0xf] %vm446_vm5, %v445_v1 }
 0x128   : > { %v456_v12 = vpop.xlane.xlu0 %455 }
 0x129   : > { %457 = vst.msk [vmem:[%s289_s25] sm:$0xf] %vm446_vm5, %v456_v12 }
 0x135   : > { %v475_v17 = vpop.xlane.xlu1 %474 }
 0x136   : > { %477 = vst.msk [vmem:[%s292_s30] sm:$0x1] %vm476_vm6, %v475_v17 }
 0x137 PF: > { %s21_s20 = sadd.s32 1, %s844_s20   ;;  %s1096_s15 = smov %s828_s16 }
 0x138   : > { %p18_p9 = scmp.ge.s32.totalorder %s21_s20, 4   ;;  %s1097_s16 = smov %s832_s17 }
 0x139   : > { %s1098_s17 = smov %s924_s27  ;;  %s1099_s18 = smov %s840_s19 }
 0x13a   : > { %s1100_s19 = smov %s1102_s22  ;;  %20 = sbr.rel (!%p18_p9) target bundleno = 6 (0x6), region = 113 }
 0x141   :  { %523 = vsyncpa [#allocation6], 1 }
 0x142   :  { %525 = vsyncpa [#allocation6 + $0x1], 1 }
 0x143   :  { %526 = vsyncpa [#allocation8], 1 }
 0x144   :  { %528 = vsyncpa [#allocation8 + $0x1], 1 }

</bundles_post_ra>
